<compile_context>
chip_gen: v7x
topology: tpu7x:2x2x1
jax: 0.10.0
libtpu: 0.0.40
codegen_flags: <defaults>
</compile_context>

<pallas_src>
import jax
import jax.numpy as jnp
from jax.experimental import pallas as pl
from jax.experimental.pallas import tpu as pltpu


def _round_up(n, m):
    return ((n + m - 1) // m) * m


def ddpg_actor_kernel(x_ref, w1_ref, w2_ref, w3_ref, b_ref, o_ref):
    h1_p = w1_ref.shape[1]
    h2_p = w2_ref.shape[1]
    act_p = w3_ref.shape[1]

    # Layer 1: Linear(obs, 400) + ReLU  (bf16 MXU operands, f32 accumulate/epilogue)
    x = x_ref[...].astype(jnp.bfloat16)
    h1 = jnp.dot(x, w1_ref[...], preferred_element_type=jnp.float32)
    h1 = jnp.maximum(h1 + b_ref[0:1, 0:h1_p], 0.0)

    # Layer 2: Linear(400, 300) + ReLU
    h2 = jnp.dot(h1.astype(jnp.bfloat16), w2_ref[...],
                 preferred_element_type=jnp.float32)
    h2 = jnp.maximum(h2 + b_ref[1:2, 0:h2_p], 0.0)

    # Layer 3: Linear(300, act) + Tanh  (f32 tanh on the EUP)
    h3 = jnp.dot(h2.astype(jnp.bfloat16), w3_ref[...],
                 preferred_element_type=jnp.float32)
    o_ref[...] = jnp.tanh(h3 + b_ref[2:3, 0:act_p]).astype(o_ref.dtype)


def init_params(key, obs_size, act_size):
    """PyTorch-default-like Linear init (U(-1/sqrt(fan_in), +)); f32, [in, out] weights."""
    def linear_init(k, fan_in, fan_out):
        kw, kb = jax.random.split(k)
        bound = 1.0 / jnp.sqrt(jnp.float32(fan_in))
        w = jax.random.uniform(kw, (fan_in, fan_out), jnp.float32, -bound, bound)
        b = jax.random.uniform(kb, (1, fan_out), jnp.float32, -bound, bound)
        return w, b

    k1, k2, k3 = jax.random.split(key, 3)
    w1, b1 = linear_init(k1, obs_size, 400)
    w2, b2 = linear_init(k2, 400, 300)
    w3, b3 = linear_init(k3, 300, act_size)
    return {"w1": w1, "b1": b1, "w2": w2, "b2": b2, "w3": w3, "b3": b3}


def pack_params(params):
    """One-time (outside the hot loop) pad + bf16 cast + bias packing."""
    w1, b1 = params["w1"], params["b1"]
    w2, b2 = params["w2"], params["b2"]
    w3, b3 = params["w3"], params["b3"]
    obs, h1 = w1.shape
    _, h2 = w2.shape
    _, act = w3.shape

    obs_p = _round_up(obs, 8)      # sublane-align w1's contraction dim
    h1_p = _round_up(h1, 128)      # 400 -> 512
    h2_p = _round_up(h2, 128)      # 300 -> 384
    act_p = _round_up(act, 128)    # act -> 128 (lane-dense output stores)

    def pad2(a, rows, cols):
        return jnp.pad(a, ((0, rows - a.shape[0]), (0, cols - a.shape[1])))

    w1_p = pad2(w1, obs_p, h1_p).astype(jnp.bfloat16)
    w2_p = pad2(w2, h1_p, h2_p).astype(jnp.bfloat16)
    w3_p = pad2(w3, h2_p, act_p).astype(jnp.bfloat16)

    # Pack the three biases (kept f32) into one [8, max_width] buffer; rows 0/1/2.
    bw = max(h1_p, h2_p, act_p)
    bpack = jnp.zeros((8, bw), jnp.float32)
    bpack = bpack.at[0, :h1].set(b1.reshape(-1))
    bpack = bpack.at[1, :h2].set(b2.reshape(-1))
    bpack = bpack.at[2, :act].set(b3.reshape(-1))

    return {"w1": w1_p, "w2": w2_p, "w3": w3_p, "bpack": bpack,
            "obs_size": obs, "act_size": act}


def ddpg_actor_forward(x, packed):
    """x: [B, obs_size] float32. packed: output of pack_params()."""
    B, obs = x.shape
    obs_p = packed["w1"].shape[0]
    act_p = packed["w3"].shape[1]
    act = packed["act_size"]
    b_p = _round_up(max(B, 1), 8)

    x_p = jnp.pad(x, ((0, b_p - B), (0, obs_p - obs)))

    vmem = pl.BlockSpec(memory_space=pltpu.MemorySpace.VMEM)
    out = pl.pallas_call(
        ddpg_actor_kernel,
        out_shape=jax.ShapeDtypeStruct((b_p, act_p), jnp.float32),
        in_specs=[vmem] * 5,
        out_specs=vmem,
    )(x_p, packed["w1"], packed["w2"], packed["w3"], packed["bpack"])
    return out[:B, :act]


if __name__ == "__main__":
    key = jax.random.PRNGKey(0)
    k_params, k_x = jax.random.split(key)

    batch = 2
    obs_size = 8
    act_size = 4

    params = init_params(k_params, obs_size, act_size)
    packed = pack_params(params)
    x = jax.random.normal(k_x, (batch, obs_size), jnp.float32)

    out = jax.block_until_ready(ddpg_actor_forward(x, packed))
    assert out.shape == (batch, act_size)

    # Reference 1: exact mimic of the kernel's numerics (bf16 matmul operands,
    # f32 accumulation / bias / activations) -> tight tolerance.
    w1b = params["w1"].astype(jnp.bfloat16)
    w2b = params["w2"].astype(jnp.bfloat16)
    w3b = params["w3"].astype(jnp.bfloat16)
    r = jnp.maximum(jnp.dot(x.astype(jnp.bfloat16), w1b,
                            preferred_element_type=jnp.float32) + params["b1"], 0.0)
    r = jnp.maximum(jnp.dot(r.astype(jnp.bfloat16), w2b,
                            preferred_element_type=jnp.float32) + params["b2"], 0.0)
    r = jnp.tanh(jnp.dot(r.astype(jnp.bfloat16), w3b,
                         preferred_element_type=jnp.float32) + params["b3"])
    assert jnp.allclose(out, r, atol=1e-3, rtol=1e-3)

    # Reference 2: original full-f32 module semantics -> loose tolerance, since
    # weights are stored in bf16 (a deliberate optimization).
    ref = jnp.maximum(x @ params["w1"] + params["b1"], 0.0)
    ref = jnp.maximum(ref @ params["w2"] + params["b2"], 0.0)
    ref = jnp.tanh(ref @ params["w3"] + params["b3"])
    assert jnp.allclose(out, ref, atol=2e-2, rtol=2e-2)

    print("KERNEL_OK")
</pallas_src>

<mosaic_0001>
module attributes {stable_mosaic.version = 11 : i64} {
  func.func @ddpg_actor_kernel(%arg0: memref<8x8xf32, #tpu.memory_space<vmem>>, %arg1: memref<8x512xbf16, #tpu.memory_space<vmem>>, %arg2: memref<512x384xbf16, #tpu.memory_space<vmem>>, %arg3: memref<384x128xbf16, #tpu.memory_space<vmem>>, %arg4: memref<8x512xf32, #tpu.memory_space<vmem>>, %arg5: memref<8x128xf32, #tpu.memory_space<vmem>>) attributes {dimension_semantics = [], scalar_prefetch = 0 : i64, scratch_operands = 0 : i64, tpu.core_type = #tpu.core_type<tc>} {
    %c0 = arith.constant 0 : index
    %c0_0 = arith.constant 0 : index
    %0 = vector.load %arg0[%c0, %c0_0] : memref<8x8xf32, #tpu.memory_space<vmem>>, vector<8x8xf32>
    %1 = arith.truncf %0 : vector<8x8xf32> to vector<8x8xbf16>
    %c0_1 = arith.constant 0 : index
    %c0_2 = arith.constant 0 : index
    %2 = vector.load %arg1[%c0_1, %c0_2] : memref<8x512xbf16, #tpu.memory_space<vmem>>, vector<8x512xbf16>
    %cst = arith.constant dense<0.000000e+00> : vector<8x512xf32>
    %3 = tpu.matmul %1, %2, %cst {dimension_numbers = #tpu.dot_dimension_numbers<[1], [0], [0], [1], [0, 0, 1, 1], [], []>} : vector<8x8xbf16>, vector<8x512xbf16>, vector<8x512xf32> -> vector<8x512xf32>
    %c0_3 = arith.constant 0 : index
    %c0_4 = arith.constant 0 : index
    %4 = vector.load %arg4[%c0_3, %c0_4] : memref<8x512xf32, #tpu.memory_space<vmem>>, vector<1x512xf32>
    %5 = vector.broadcast %4 : vector<1x512xf32> to vector<8x512xf32>
    %6 = arith.addf %3, %5 : vector<8x512xf32>
    %cst_5 = arith.constant 0.000000e+00 : f32
    %7 = vector.broadcast %cst_5 : f32 to vector<8x512xf32>
    %8 = arith.maximumf %6, %7 : vector<8x512xf32>
    %9 = arith.truncf %8 : vector<8x512xf32> to vector<8x512xbf16>
    %c0_6 = arith.constant 0 : index
    %c0_7 = arith.constant 0 : index
    %10 = vector.load %arg2[%c0_6, %c0_7] : memref<512x384xbf16, #tpu.memory_space<vmem>>, vector<512x384xbf16>
    %cst_8 = arith.constant dense<0.000000e+00> : vector<8x384xf32>
    %11 = tpu.matmul %9, %10, %cst_8 {dimension_numbers = #tpu.dot_dimension_numbers<[1], [0], [0], [1], [0, 0, 1, 1], [], []>} : vector<8x512xbf16>, vector<512x384xbf16>, vector<8x384xf32> -> vector<8x384xf32>
    %c1 = arith.constant 1 : index
    %c0_9 = arith.constant 0 : index
    %12 = vector.load %arg4[%c1, %c0_9] : memref<8x512xf32, #tpu.memory_space<vmem>>, vector<1x384xf32>
    %13 = vector.broadcast %12 : vector<1x384xf32> to vector<8x384xf32>
    %14 = arith.addf %11, %13 : vector<8x384xf32>
    %cst_10 = arith.constant 0.000000e+00 : f32
    %15 = vector.broadcast %cst_10 : f32 to vector<8x384xf32>
    %16 = arith.maximumf %14, %15 : vector<8x384xf32>
    %17 = arith.truncf %16 : vector<8x384xf32> to vector<8x384xbf16>
    %c0_11 = arith.constant 0 : index
    %c0_12 = arith.constant 0 : index
    %18 = vector.load %arg3[%c0_11, %c0_12] : memref<384x128xbf16, #tpu.memory_space<vmem>>, vector<384x128xbf16>
    %cst_13 = arith.constant dense<0.000000e+00> : vector<8x128xf32>
    %19 = tpu.matmul %17, %18, %cst_13 {dimension_numbers = #tpu.dot_dimension_numbers<[1], [0], [0], [1], [0, 0, 1, 1], [], []>} : vector<8x384xbf16>, vector<384x128xbf16>, vector<8x128xf32> -> vector<8x128xf32>
    %c2 = arith.constant 2 : index
    %c0_14 = arith.constant 0 : index
    %20 = vector.load %arg4[%c2, %c0_14] : memref<8x512xf32, #tpu.memory_space<vmem>>, vector<1x128xf32>
    %21 = vector.broadcast %20 : vector<1x128xf32> to vector<8x128xf32>
    %22 = arith.addf %19, %21 : vector<8x128xf32>
    %23 = math.tanh %22 : vector<8x128xf32>
    %c0_15 = arith.constant 0 : index
    %c0_16 = arith.constant 0 : index
    %24 = vector.load %arg5[%c0_15, %c0_16] : memref<8x128xf32, #tpu.memory_space<vmem>>, vector<8x128xf32>
    tpu.vector_store %arg5[%c0_15, %c0_16], %23 {strides = array<i32>} : memref<8x128xf32, #tpu.memory_space<vmem>>, vector<8x128xf32>,
    return
  }
}

</mosaic_0001>

<bundles_post_ra>
// kernel: tpu_custom_call.1
= control target key start
LH: loop header
LB: loop body
LE: loop exit
PB: predicated region body
PF: predicated region fallthrough
CT: control target
= control target key end

     0   :  { %10 = vsyncpa [#allocation3], 0  ;;  %s2041_s0 = inlined_call_operand.hbm [shape: f32[8,8], index: 0, kind: input, shape index: {}]   ;;  %s2042_s1 = inlined_call_operand.hbm [shape: bf16[8,512], index: 1, kind: input, shape index: {}]   ;;  %s2043_s2 = inlined_call_operand.hbm [shape: bf16[512,384], index: 2, kind: input, shape index: {}]   ;;  %s2044_s3 = inlined_call_operand.hbm [shape: bf16[384,128], index: 3, kind: input, shape index: {}]   ;;  %s2045_s4 = inlined_call_operand.hbm [shape: f32[8,512], index: 4, kind: input, shape index: {}]   ;;  %s2046_s5 = inlined_call_operand.hbm [shape: f32[8,128], index: 5, kind: output, shape index: {}]  }
   0x1   :  { %11 = vsyncpa [#allocation6], 0 }
   0x2   :  { %12 = vsyncpa [#allocation9], 0 }
   0x3   :  { %13 = vsyncpa [#allocation4], 0  ;;  %s1885_s18 = smov [#allocation5]   ;;  %s1886_s20 = smov [#allocation8]  }
   0x4   :  { %s30_s19 = sshll.u32 %s1885_s18, 4  ;;  %s51_s21 = sshll.u32 %s1886_s20, 4  ;;  %s31_s19 = int_to_ptr.vmem [resolvable:$true] %s30_s19  ;;  %s1928_s21 = int_to_ptr.vmem [resolvable:$true] %s51_s21 }
   0x5   :  { %s1745_s24 = scalar_lea.hbm %s2042_s1, 256 }
   0x6   :  { %p1746_p0 = scmp.ne.s32.totalorder %s2042_s1, %s1745_s24  ;;  %p1749_p1 = scmp.lt.u32.totalorder %s1745_s24, %s2042_s1 }
   0x8   :  { %p1751_p2 = pnand %p1749_p1, %p1746_p0 }
   0xa   :  { %1754 = shalt.err (!%p1751_p2)
}
   0xb   :  { %s1755_s29 = scalar_lea.vmem %s31_s19, 256  ;;  %p1760_p4 = scmp.lt.s32.totalorder %s31_s19, %s31_s19 }
   0xc   :  { %p1756_p3 = scmp.ne.s32.totalorder %s31_s19, %s1755_s29  ;;  %p1761_p5 = scmp.lt.s32.totalorder %s1755_s29, %s1755_s29 }
   0xe   :  { %p1762_p6 = por %p1761_p5, %p1760_p4 }
  0x10   :  { %p1763_p7 = pnand %p1762_p6, %p1756_p3 }
  0x12   :  { %1766 = shalt.err (!%p1763_p7)
}
  0x13   :  { %33 = dma.hbm_to_vmem [thread:$0]  %s2042_s1, 256, %s31_s19, [#allocation6]  }
  0x14   :  { %s1767_s9 = scalar_lea.hbm %s2044_s3, 3072 }
  0x15   :  { %p1768_p8 = scmp.ne.s32.totalorder %s2044_s3, %s1767_s9  ;;  %p1771_p9 = scmp.lt.u32.totalorder %s1767_s9, %s2044_s3 }
  0x17   :  { %p1773_p10 = pnand %p1771_p9, %p1768_p8 }
  0x19   :  { %1776 = shalt.err (!%p1773_p10)
}
  0x1a   :  { %s1777_s14 = scalar_lea.vmem %s1928_s21, 3072  ;;  %p1782_p12 = scmp.lt.s32.totalorder %s1928_s21, %s1928_s21 }
  0x1b   :  { %p1778_p11 = scmp.ne.s32.totalorder %s1928_s21, %s1777_s14  ;;  %p1783_p13 = scmp.lt.s32.totalorder %s1777_s14, %s1777_s14 }
  0x1d   :  { %p1784_p0 = por %p1783_p13, %p1782_p12 }
  0x1f   :  { %p1785_p1 = pnand %p1784_p0, %p1778_p11 }
  0x21   :  { %1788 = shalt.err (!%p1785_p1)
}
  0x22   :  { %s1887_s1 = smov 64   ;;  %s1888_s15 = smov 4  }
  0x23   :  { %57 = dma.hbm_to_vmem [thread:$0]  %s2044_s3, 3072, %s1928_s21, [#allocation9], %s1887_s1, %s1887_s1, %s1888_s15  }
  0x24   :  { %s1889_s18 = smov [#allocation2]   ;;  %s1890_s20 = smov [#allocation7]  }
  0x25   :  { %s20_s19 = sshll.u32 %s1889_s18, 4  ;;  %s39_s22 = sshll.u32 %s1890_s20, 4  ;;  %s21_s19 = int_to_ptr.vmem [resolvable:$true] %s20_s19  ;;  %s1959_s22 = int_to_ptr.vmem [resolvable:$true] %s39_s22 }
  0x26   :  { %s1789_s25 = scalar_lea.hbm %s2041_s0, 128 }
  0x27   :  { %p1790_p2 = scmp.ne.s32.totalorder %s2041_s0, %s1789_s25  ;;  %p1793_p3 = scmp.lt.u32.totalorder %s1789_s25, %s2041_s0 }
  0x29   :  { %p1795_p4 = pnand %p1793_p3, %p1790_p2 }
  0x2b   :  { %1798 = shalt.err (!%p1795_p4)
}
  0x2c   :  { %s1799_s3 = scalar_lea.vmem %s21_s19, 128  ;;  %p1804_p6 = scmp.lt.s32.totalorder %s21_s19, %s21_s19 }
  0x2d   :  { %p1800_p5 = scmp.ne.s32.totalorder %s21_s19, %s1799_s3  ;;  %p1805_p7 = scmp.lt.s32.totalorder %s1799_s3, %s1799_s3 }
  0x2f   :  { %p1806_p8 = por %p1805_p7, %p1804_p6 }
  0x31   :  { %p1807_p9 = pnand %p1806_p8, %p1800_p5 }
  0x33   :  { %1810 = shalt.err (!%p1807_p9)
}
  0x34   :  { %23 = dma.hbm_to_vmem [thread:$0]  %s2041_s0, 128, %s21_s19, [#allocation3]  }
  0x35   :  { %s1811_s8 = scalar_lea.hbm %s2043_s2, 12288 }
  0x36   :  { %p1812_p10 = scmp.ne.s32.totalorder %s2043_s2, %s1811_s8  ;;  %p1815_p11 = scmp.lt.u32.totalorder %s1811_s8, %s2043_s2 }
  0x38   :  { %p1817_p12 = pnand %p1815_p11, %p1812_p10 }
  0x3a   :  { %1820 = shalt.err (!%p1817_p12)
}
  0x3b   :  { %s1821_s13 = scalar_lea.vmem %s1959_s22, 12288  ;;  %p1826_p0 = scmp.lt.s32.totalorder %s1959_s22, %s1959_s22 }
  0x3c   :  { %p1822_p13 = scmp.ne.s32.totalorder %s1959_s22, %s1821_s13  ;;  %p1827_p1 = scmp.lt.s32.totalorder %s1821_s13, %s1821_s13 }
  0x3e   :  { %p1828_p2 = por %p1827_p1, %p1826_p0 }
  0x40   :  { %p1829_p3 = pnand %p1828_p2, %p1822_p13 }
  0x42   :  { %1832 = shalt.err (!%p1829_p3)
}
  0x43   :  { %s1891_s0 = smov 192   ;;  %s1892_s14 = smov 12  }
  0x44   :  { %45 = dma.hbm_to_vmem [thread:$0]  %s2043_s2, 12288, %s1959_s22, [#allocation6], %s1891_s0, %s1891_s0, %s1892_s14  }
  0x45   :  { %s1893_s16 = smov [#allocation10]   ;;  %s1833_s20 = scalar_lea.hbm %s2045_s4, 512 }
  0x46   :  { %s64_s17 = sshll.u32 %s1893_s16, 4  ;;  %p1834_p4 = scmp.ne.s32.totalorder %s2045_s4, %s1833_s20  ;;  %s65_s17 = int_to_ptr.vmem [resolvable:$true] %s64_s17 }
  0x47   :  { %p1837_p5 = scmp.lt.u32.totalorder %s1833_s20, %s2045_s4 }
  0x49   :  { %p1839_p6 = pnand %p1837_p5, %p1834_p4 }
  0x4b   :  { %1842 = shalt.err (!%p1839_p6)
}
  0x4c   :  { %s1843_s27 = scalar_lea.vmem %s65_s17, 512  ;;  %p1848_p8 = scmp.lt.s32.totalorder %s65_s17, %s65_s17 }
  0x4d   :  { %p1844_p7 = scmp.ne.s32.totalorder %s65_s17, %s1843_s27  ;;  %p1849_p9 = scmp.lt.s32.totalorder %s1843_s27, %s1843_s27 }
  0x4f   :  { %p1850_p10 = por %p1849_p9, %p1848_p8 }
  0x51   :  { %p1851_p11 = pnand %p1850_p10, %p1844_p7 }
  0x53   :  { %1854 = shalt.err (!%p1851_p11)
}
  0x54   :  { %67 = dma.hbm_to_vmem [thread:$0]  %s2045_s4, 512, %s65_s17, [#allocation9]  }
  0x55   :  { %1877 = dma.done.wait [#allocation3], 128  }
  0x56   :  { %1878 = vsyncadd [#allocation3], 4294967168 }
  0x57   :  { %1879 = dma.done.wait [#allocation6], 12544  }
  0x58   :  { %1880 = vsyncadd [#allocation6], 4294954752 }
  0x59   :  { %1881 = dma.done.wait [#allocation9], 3584  }
  0x5a   :  { %1882 = vsyncadd [#allocation9], 4294963712  ;;  %v1894_v0 = vmov 0   ;;  %v86_v1 = vld [vmem:[#allocation5] sm:$0xff]  ;;  %vm124_vm0 = vcmask 1043456   ;;  %v84_v2 = vld [vmem:[#allocation2] sm:$0xff]  ;;  %v90_v61 = vlaneseq }
  0x5b   :  { %169 = vmatprep.mubr.bf16.mxu0 %v1894_v0  ;;  %210 = vmatprep.mubr.bf16.mxu1 %v1894_v0  ;;  %v87_v3 = vld [vmem:[#allocation5 + $0x8] sm:$0xff]  ;;  %v1346_v4 = vcombine.high %v86_v1, %v86_v1  ;;  %v1345_v5 = vcombine.low %v86_v1, %v86_v1  ;;  %v1593_v8 = vld [vmem:[#allocation7 + $0x4] ss:$12 sps:$4 sm:$0xff]   ;;  %v85_v10 = vpack.c.bf16 %v84_v2, %v84_v2  ;;  %vm120_vm1 = vcmask 64512   ;;  %v1591_v12 = vld [vmem:[#allocation7] ss:$12 sps:$4 sm:$0xff]  }
  0x5c   :  { %v1348_v6 = vcombine.high %v87_v3, %v87_v3  ;;  %v1347_v7 = vcombine.low %v87_v3, %v87_v3  ;;  %v1596_v13 = vld [vmem:[#allocation7 + $0x1c] ss:$12 sps:$4 sm:$0xff]   ;;  %v1594_v14 = vld [vmem:[#allocation7 + $0x18] ss:$12 sps:$4 sm:$0xff]   ;;  %v1599_v15 = vld [vmem:[#allocation7 + $0x34] ss:$12 sps:$4 sm:$0xff]  }
  0x5d   :  { %1349 = vmatprep.subr.msk.bf16.mxu0 %vm124_vm0, %v1346_v4  ;;  %v126_v9 = vsel %vm124_vm0, %v1345_v5, 0  ;;  %v1597_v16 = vld [vmem:[#allocation7 + $0x30] ss:$12 sps:$4 sm:$0xff]   ;;  %v1602_v17 = vld [vmem:[#allocation7 + $0x4c] ss:$12 sps:$4 sm:$0xff]   ;;  %v2002_v62 = vshrl.u32 %v90_v61, 7 }
  0x5e   :  { %1351 = vmatprep.subr.msk.bf16.mxu1 %vm124_vm0, %v1348_v6  ;;  %138 = vmatpush1.bf16.msra.mxu0 %v126_v9  ;;  %v132_v11 = vsel %vm124_vm0, %v1347_v7, 0  ;;  %v1618_v18 = vld [vmem:[#allocation7 + $0xc8] ss:$12 sps:$4 sm:$0xff]   ;;  %v1605_v21 = vld [vmem:[#allocation7 + $0x64] ss:$12 sps:$4 sm:$0xff]   ;;  %vm1896_vm2 = vmmov 0  }
  0x5f   :  { %179 = vmatpush1.bf16.msra.mxu1 %v132_v11  ;;  %885 = vmatprep.subr.bf16.mxu0 %v1593_v8  ;;  %v1619_v19 = vld [vmem:[#allocation7 + $0x8] ss:$12 sps:$4 sm:$0xff]   ;;  %v1623_v22 = vld [vmem:[#allocation7 + $0xe0] ss:$12 sps:$4 sm:$0xff]   ;;  %v1628_v26 = vld [vmem:[#allocation7 + $0xf8] ss:$12 sps:$4 sm:$0xff]  }
  0x60   :  { %v1600_v20 = vld [vmem:[#allocation7 + $0x48] ss:$12 sps:$4 sm:$0xff]   ;;  %1473 = vmatprep.subr.bf16.mxu1 %v1618_v18  ;;  %v1624_v23 = vld [vmem:[#allocation7 + $0x20] ss:$12 sps:$4 sm:$0xff]   ;;  %v1629_v27 = vld [vmem:[#allocation7 + $0x38] ss:$12 sps:$4 sm:$0xff]  }
  0x61   :  { %1350 = vmatmul.mubr.msk.bf16.vlgmr.msra.gmra.mrb[0].mxu0 %vm120_vm1, %v85_v10  ;;  %v1603_v24 = vld [vmem:[#allocation7 + $0x60] ss:$12 sps:$4 sm:$0xff]   ;;  %v1608_v25 = vld [vmem:[#allocation7 + $0x7c] ss:$12 sps:$4 sm:$0xff]   ;;  %v1606_v28 = vld [vmem:[#allocation7 + $0x78] ss:$12 sps:$4 sm:$0xff]  }
  0x62   :  { %1352 = vmatmul.mubr.msk.bf16.vlgmr.msra.gmra.mrb[0].mxu1 %vm120_vm1, %v85_v10  ;;  %886 = vmatpush1.bf16.msra.mxu0 %v1591_v12  ;;  %v1633_v29 = vld [vmem:[#allocation7 + $0x110] ss:$12 sps:$4 sm:$0xff]   ;;  %v1611_v31 = vld [vmem:[#allocation7 + $0x94] ss:$12 sps:$4 sm:$0xff]   ;;  %v1614_v35 = vld [vmem:[#allocation7 + $0xac] ss:$12 sps:$4 sm:$0xff]  }
  0x63   :  { %887 = vmatprep.subr.bf16.mxu0 %v1596_v13  ;;  %1474 = vmatpush3.bf16.msra.mxu1 %v1619_v19  ;;  %v1634_v30 = vld [vmem:[#allocation7 + $0x50] ss:$12 sps:$4 sm:$0xff]   ;;  %v1638_v33 = vld [vmem:[#allocation7 + $0x128] ss:$12 sps:$4 sm:$0xff]   ;;  %v1643_v37 = vld [vmem:[#allocation7 + $0x140] ss:$12 sps:$4 sm:$0xff]  }
  0x64   :  { %1475 = vmatprep.subr.bf16.mxu1 %v1623_v22  ;;  %v1609_v32 = vld [vmem:[#allocation7 + $0x90] ss:$12 sps:$4 sm:$0xff]   ;;  %v1639_v34 = vld [vmem:[#allocation7 + $0x68] ss:$12 sps:$4 sm:$0xff]   ;;  %v1644_v39 = vld [vmem:[#allocation7 + $0x80] ss:$12 sps:$4 sm:$0xff]  }
  0x65   :  { %v1612_v36 = vld [vmem:[#allocation7 + $0xa8] ss:$12 sps:$4 sm:$0xff]   ;;  %v1617_v38 = vld [vmem:[#allocation7 + $0xc4] ss:$12 sps:$4 sm:$0xff]   ;;  %v1615_v40 = vld [vmem:[#allocation7 + $0xc0] ss:$12 sps:$4 sm:$0xff]  }
  0x66   :  { %888 = vmatpush1.bf16.msra.mxu0 %v1594_v14  ;;  %v1622_v41 = vld [vmem:[#allocation7 + $0xdc] ss:$12 sps:$4 sm:$0xff]   ;;  %v1620_v42 = vld [vmem:[#allocation7 + $0xd8] ss:$12 sps:$4 sm:$0xff]   ;;  %v1627_v43 = vld [vmem:[#allocation7 + $0xf4] ss:$12 sps:$4 sm:$0xff]  }
  0x67   :  { %889 = vmatprep.subr.bf16.mxu0 %v1599_v15  ;;  %1476 = vmatpush3.bf16.msra.mxu1 %v1624_v23  ;;  %v1625_v44 = vld [vmem:[#allocation7 + $0xf0] ss:$12 sps:$4 sm:$0xff]   ;;  %v1632_v45 = vld [vmem:[#allocation7 + $0x10c] ss:$12 sps:$4 sm:$0xff]   ;;  %v1630_v46 = vld [vmem:[#allocation7 + $0x108] ss:$12 sps:$4 sm:$0xff]  }
  0x68   :  { %1477 = vmatprep.subr.bf16.mxu1 %v1628_v26  ;;  %v1637_v47 = vld [vmem:[#allocation7 + $0x124] ss:$12 sps:$4 sm:$0xff]   ;;  %v1635_v48 = vld [vmem:[#allocation7 + $0x120] ss:$12 sps:$4 sm:$0xff]   ;;  %v1642_v49 = vld [vmem:[#allocation7 + $0x13c] ss:$12 sps:$4 sm:$0xff]  }
  0x69   :  { %v1640_v50 = vld [vmem:[#allocation7 + $0x138] ss:$12 sps:$4 sm:$0xff]   ;;  %v1647_v51 = vld [vmem:[#allocation7 + $0x154] ss:$12 sps:$4 sm:$0xff]   ;;  %v1645_v53 = vld [vmem:[#allocation7 + $0x150] ss:$12 sps:$4 sm:$0xff]  }
  0x6a   :  { %890 = vmatpush1.bf16.msra.mxu0 %v1597_v16  ;;  %v1648_v52 = vld [vmem:[#allocation7 + $0x158] ss:$12 sps:$4 sm:$0xff]   ;;  %v1653_v56 = vld [vmem:[#allocation7 + $0x170] ss:$12 sps:$4 sm:$0xff]   ;;  %v1650_v57 = vld [vmem:[#allocation7 + $0x168] ss:$12 sps:$4 sm:$0xff]  }
  0x6b   :  { %891 = vmatprep.subr.bf16.mxu0 %v1602_v17  ;;  %1478 = vmatpush3.bf16.msra.mxu1 %v1629_v27  ;;  %v1649_v54 = vld [vmem:[#allocation7 + $0x98] ss:$12 sps:$4 sm:$0xff]   ;;  %v1654_v58 = vld [vmem:[#allocation7 + $0xb0] ss:$12 sps:$4 sm:$0xff]   ;;  %v1658_v60 = vld [vmem:[#allocation7 + $0x248] ss:$12 sps:$4 sm:$0xff]  }
  0x6c   :  { %1479 = vmatprep.subr.bf16.mxu1 %v1633_v29  ;;  %v1652_v55 = vld [vmem:[#allocation7 + $0x16c] ss:$12 sps:$4 sm:$0xff]   ;;  %v1657_v59 = vld [vmem:[#allocation7 + $0x184] ss:$12 sps:$4 sm:$0xff]   ;;  %v92_v63 = vsub.s32 0, %v2002_v62  ;;  %v96_v1 = vsub.s32 1, %v2002_v62 }
  0x6d   :  { %v2005_v0 = vld [vmem:[#allocation10] ss:$8 sm:$0xf]  ;;  %v104_v2 = vsub.s32 3, %v2002_v62  ;;  %s1897_s4 = smov [#allocation11]  }
  0x6e   :  { %892 = vmatpush1.bf16.msra.mxu0 %v1600_v20  ;;  %v93_v3 = vrot.slane %v2005_v0, %v92_v63  ;;  %v97_v4 = vrot.slane %v2005_v0, %v96_v1  ;;  %v1659_v22 = vld [vmem:[#allocation7 + $0x188] ss:$12 sps:$4 sm:$0xff]   ;;  %v1660_v27 = vld [vmem:[#allocation7 + $0x198] ss:$12 sps:$4 sm:$0xff]   ;;  %s1334_s28 = sshll.u32 %s1897_s4, 4  ;;  %s1335_s28 = int_to_ptr.vmem [resolvable:$true] %s1334_s28 }
  0x6f   :  { %893 = vmatprep.subr.bf16.mxu0 %v1605_v21  ;;  %1480 = vmatpush3.bf16.msra.mxu1 %v1634_v30  ;;  %v105_v5 = vrot.slane %v2005_v0, %v104_v2  ;;  %v1655_v21 = vld [vmem:[#allocation7 + $0x180] ss:$12 sps:$4 sm:$0xff]   ;;  %v1668_v30 = vld [vmem:[#allocation7 + $0x278] ss:$12 sps:$4 sm:$0xff]   ;;  %v1701_v2 = vld [vmem:[#allocation7 + $0x270] ss:$12 sps:$4 sm:$0xff]   ;;  %p1860_p13 = scmp.lt.s32.totalorder %s1335_s28, %s1335_s28 }
  0x70   :  { %1481 = vmatprep.subr.bf16.mxu1 %v1638_v33  ;;  %v1667_v29 = vld [vmem:[#allocation7 + $0x1b4] ss:$12 sps:$4 sm:$0xff]   ;;  %v1672_v33 = vld [vmem:[#allocation7 + $0x1cc] ss:$12 sps:$4 sm:$0xff]   ;;  %s1855_s29 = scalar_lea.vmem %s1335_s28, 128 }
  0x71   :  { %v1698_v61 = vld [vmem:[#allocation7 + $0x258] ss:$12 sps:$4 sm:$0xff]   ;;  %p1856_p12 = scmp.ne.s32.totalorder %s1335_s28, %s1855_s29  ;;  %p1861_p0 = scmp.lt.s32.totalorder %s1855_s29, %s1855_s29 }
  0x72   :  { %894 = vmatpush1.bf16.msra.mxu0 %v1603_v24  ;;  %v1662_v24 = vld [vmem:[#allocation7 + $0x19c] ss:$12 sps:$4 sm:$0xff]  }
  0x73   :  { %895 = vmatprep.subr.bf16.mxu0 %v1608_v25  ;;  %1482 = vmatpush3.bf16.msra.mxu1 %v1639_v34  ;;  %v1663_v25 = vld [vmem:[#allocation7 + $0x260] ss:$12 sps:$4 sm:$0xff]   ;;  %v1673_v34 = vld [vmem:[#allocation7 + $0x290] ss:$12 sps:$4 sm:$0xff]   ;;  %p1862_p1 = por %p1861_p0, %p1860_p13 }
  0x74   :  { %1483 = vmatprep.subr.bf16.mxu1 %v1643_v37  ;;  %v1677_v37 = vld [vmem:[#allocation7 + $0x1e4] ss:$12 sps:$4 sm:$0xff]  }
  0x75   :  { %p1863_p2 = pnand %p1862_p1, %p1856_p12 }
  0x76   :  { %896 = vmatpush1.bf16.msra.mxu0 %v1606_v28  ;;  %v1664_v28 = vld [vmem:[#allocation7 + $0x1a0] ss:$12 sps:$4 sm:$0xff]  }
  0x77   :  { %897 = vmatprep.subr.bf16.mxu0 %v1611_v31  ;;  %1484 = vmatpush3.bf16.msra.mxu1 %v1644_v39  ;;  %v1665_v31 = vld [vmem:[#allocation7 + $0x1b0] ss:$12 sps:$4 sm:$0xff]   ;;  %v100_v39 = vsub.s32 2, %v2002_v62 }
  0x78   :  { %1485 = vmatprep.subr.bf16.mxu1 %v1648_v52  ;;  %v1692_v52 = vld [vmem:[#allocation7 + $0x22c] ss:$12 sps:$4 sm:$0xff]   ;;  %v1737_v62 = vld [vmem:[#allocation8 + $0x90] sm:$0xff]  }
  0x7a   :  { %898 = vmatpush1.bf16.msra.mxu0 %v1609_v32  ;;  %v1669_v32 = vld [vmem:[#allocation7 + $0x1b8] ss:$12 sps:$4 sm:$0xff]  }
  0x7b   :  { %899 = vmatprep.subr.bf16.mxu0 %v1614_v35  ;;  %1486 = vmatpush3.bf16.msra.mxu1 %v1649_v54  ;;  %v1670_v35 = vld [vmem:[#allocation7 + $0x1c8] ss:$12 sps:$4 sm:$0xff]  }
  0x7c   :  { %1487 = vmatprep.subr.bf16.mxu1 %v1653_v56  ;;  %v1694_v56 = vld [vmem:[#allocation7 + $0x230] ss:$12 sps:$4 sm:$0xff]  }
  0x7e   :  { %900 = vmatpush1.bf16.msra.mxu0 %v1612_v36  ;;  %v1674_v36 = vld [vmem:[#allocation7 + $0x1d0] ss:$12 sps:$4 sm:$0xff]  }
  0x7f   :  { %901 = vmatprep.subr.bf16.mxu0 %v1617_v38  ;;  %1488 = vmatpush3.bf16.msra.mxu1 %v1654_v58  ;;  %v1678_v38 = vld [vmem:[#allocation7 + $0x2a8] ss:$12 sps:$4 sm:$0xff]  }
  0x80   :  { %1495 = vmatprep.subr.bf16.mxu1 %v1658_v60  ;;  %v1700_v60 = vld [vmem:[#allocation7 + $0x25c] ss:$12 sps:$4 sm:$0xff]  }
  0x82   :  { %902 = vmatpush1.bf16.msra.mxu0 %v1615_v40  ;;  %v1675_v40 = vld [vmem:[#allocation7 + $0x1e0] ss:$12 sps:$4 sm:$0xff]  }
  0x83   :  { %903 = vmatprep.subr.bf16.mxu0 %v1622_v41  ;;  %v1679_v41 = vld [vmem:[#allocation7 + $0x1e8] ss:$12 sps:$4 sm:$0xff]  }
  0x86   :  { %904 = vmatpush1.bf16.msra.mxu0 %v1620_v42  ;;  %v1682_v42 = vld [vmem:[#allocation7 + $0x1fc] ss:$12 sps:$4 sm:$0xff]  }
  0x87   :  { %905 = vmatprep.subr.bf16.mxu0 %v1627_v43  ;;  %v1683_v43 = vld [vmem:[#allocation7 + $0x2c0] ss:$12 sps:$4 sm:$0xff]  }
  0x8a   :  { %906 = vmatpush1.bf16.msra.mxu0 %v1625_v44  ;;  %v101_v44 = vrot.slane %v2005_v0, %v100_v39  ;;  %v1703_v0 = vld [vmem:[#allocation7 + $0x274] ss:$12 sps:$4 sm:$0xff]  }
  0x8b   :  { %907 = vmatprep.subr.bf16.mxu0 %v1632_v45  ;;  %v1680_v45 = vld [vmem:[#allocation7 + $0x1f8] ss:$12 sps:$4 sm:$0xff]  }
  0x8e   :  { %908 = vmatpush1.bf16.msra.mxu0 %v1630_v46  ;;  %v1684_v46 = vld [vmem:[#allocation7 + $0x200] ss:$12 sps:$4 sm:$0xff]  }
  0x8f   :  { %909 = vmatprep.subr.bf16.mxu0 %v1637_v47  ;;  %v1687_v47 = vld [vmem:[#allocation7 + $0x214] ss:$12 sps:$4 sm:$0xff]  }
  0x92   :  { %910 = vmatpush1.bf16.msra.mxu0 %v1635_v48  ;;  %v1688_v48 = vld [vmem:[#allocation7 + $0x2d8] ss:$12 sps:$4 sm:$0xff]  }
  0x93   :  { %911 = vmatprep.subr.bf16.mxu0 %v1642_v49 }
  0x96   :  { %912 = vmatpush1.bf16.msra.mxu0 %v1640_v50  ;;  %v1685_v50 = vld [vmem:[#allocation7 + $0x210] ss:$12 sps:$4 sm:$0xff]  }
  0x97   :  { %913 = vmatprep.subr.bf16.mxu0 %v1647_v51  ;;  %v1689_v51 = vld [vmem:[#allocation7 + $0x218] ss:$12 sps:$4 sm:$0xff]  }
  0x9a   :  { %914 = vmatpush1.bf16.msra.mxu0 %v1645_v53  ;;  %v1693_v53 = vld [vmem:[#allocation7 + $0x2f0] ss:$12 sps:$4 sm:$0xff]  }
  0x9b   :  { %915 = vmatprep.subr.bf16.mxu0 %v1652_v55  ;;  %v1690_v55 = vld [vmem:[#allocation7 + $0x228] ss:$12 sps:$4 sm:$0xff]  }
  0x9e   :  { %916 = vmatpush1.bf16.msra.mxu0 %v1650_v57  ;;  %v1697_v57 = vld [vmem:[#allocation7 + $0x244] ss:$12 sps:$4 sm:$0xff]  }
  0x9f   :  { %926 = vmatprep.subr.bf16.mxu0 %v1657_v59  ;;  %v1695_v59 = vld [vmem:[#allocation7 + $0x240] ss:$12 sps:$4 sm:$0xff]  }
 0x134   :  { %v171_v6 = vpop.f32.mrb[0].mxu0 }
 0x135   :  { %v172_v7 = vadd.f32 %v171_v6, %v93_v3  ;;  %v173_v8 = vpop.f32.mrb[1].mxu0  ;;  %v2016_v9 = vpop.f32.mrb[0].mxu1  ;;  %v1706_v3 = vld [vmem:[#allocation7 + $0x28c] ss:$12 sps:$4 sm:$0xff]  }
 0x136   :  { %v174_v10 = vadd.f32 %v173_v8, %v97_v4  ;;  %v175_v11 = vpop.f32.mrb[2].mxu0  ;;  %v214_v12 = vpop.f32.mrb[1].mxu1  ;;  %v213_v49 = vadd.f32 %v2016_v9, %v101_v44  ;;  %v1704_v4 = vld [vmem:[#allocation7 + $0x288] ss:$12 sps:$4 sm:$0xff]   ;;  %v1707_v6 = vld [vmem:[#allocation7 + $0x2a0] ss:$12 sps:$4 sm:$0xff]  }
 0x137   :  { %v219_v13 = vmax.f32 %v172_v7, 0.0  ;;  %v176_v14 = vpop.f32.mrb[3].mxu0  ;;  %v215_v15 = vadd.f32 %v214_v12, %v105_v5  ;;  %v216_v16 = vpop.f32.mrb[2].mxu1  ;;  %v1709_v5 = vld [vmem:[#allocation7 + $0x2a4] ss:$12 sps:$4 sm:$0xff]  }
 0x138   :  { %v220_v17 = vmax.f32 %v174_v10, 0.0  ;;  %v217_v18 = vpop.f32.mrb[3].mxu1  ;;  %v221_v54 = vmax.f32 %v213_v49, 0.0  ;;  %v1712_v7 = vld [vmem:[#allocation7 + $0x2bc] ss:$12 sps:$4 sm:$0xff]   ;;  %v1720_v14 = vld [vmem:[#allocation8] sm:$0xff]  }
 0x139   :  { %v222_v19 = vmax.f32 %v215_v15, 0.0  ;;  %v223_v23 = vpack.c.bf16 %v219_v13, %v219_v13  ;;  %v1710_v8 = vld [vmem:[#allocation7 + $0x2b8] ss:$12 sps:$4 sm:$0xff]   ;;  %v1715_v9 = vld [vmem:[#allocation7 + $0x2d4] ss:$12 sps:$4 sm:$0xff]   ;;  %v1721_v15 = vld [vmem:[#allocation8 + $0x48] sm:$0xff]  }
 0x13a   :  { %v224_v20 = vpack.c.bf16 %v220_v17, %v220_v17  ;;  %v225_v58 = vpack.c.bf16 %v221_v54, %v221_v54  ;;  %v1713_v10 = vld [vmem:[#allocation7 + $0x2d0] ss:$12 sps:$4 sm:$0xff]   ;;  %v1718_v11 = vld [vmem:[#allocation7 + $0x2ec] ss:$12 sps:$4 sm:$0xff]   ;;  %v1716_v12 = vld [vmem:[#allocation7 + $0x2e8] ss:$12 sps:$4 sm:$0xff]  }
 0x13b   :  { %v226_v26 = vpack.c.bf16 %v222_v19, %v222_v19  ;;  %v1719_v13 = vld [vmem:[#allocation8 + $0x40] sm:$0xff]   ;;  %v1722_v16 = vld [vmem:[#allocation8 + $0x8] sm:$0xff]   ;;  %v1723_v17 = vld [vmem:[#allocation8 + $0x50] sm:$0xff]  }
 0x13c   :  { %917 = vmatprep.mubr.bf16.mxu0 %v224_v20  ;;  %999 = vmatprep.mubr.bf16.mxu1 %v224_v20  ;;  %v1724_v18 = vld [vmem:[#allocation8 + $0x10] sm:$0xff]   ;;  %v1725_v19 = vld [vmem:[#allocation8 + $0x58] sm:$0xff]  }
 0x13d   :  { %918 = vmatmul.mubr.bf16.vlgmr.msra.gmra.mrb[4].mxu0 %v223_v23  ;;  %1000 = vmatmul.mubr.bf16.vlgmr.msra.gmra.mrb[4].mxu1 %v223_v23  ;;  %v1726_v20 = vld [vmem:[#allocation8 + $0x18] sm:$0xff]   ;;  %v1729_v23 = vld [vmem:[#allocation8 + $0x68] sm:$0xff]  }
 0x13e   :  { %927 = vmatpush1.bf16.msra.mxu0 %v1655_v21  ;;  %1496 = vmatpush3.bf16.msra.mxu1 %v1659_v22  ;;  %v1727_v21 = vld [vmem:[#allocation8 + $0x60] sm:$0xff]  }
 0x13f   :  { %928 = vmatprep.subr.bf16.mxu0 %v1662_v24  ;;  %1497 = vmatprep.subr.bf16.mxu1 %v1663_v25  ;;  %v1728_v22 = vld [vmem:[#allocation8 + $0x20] sm:$0xff]   ;;  %v1730_v24 = vld [vmem:[#allocation8 + $0x28] sm:$0xff]   ;;  %v1731_v25 = vld [vmem:[#allocation8 + $0x70] sm:$0xff]  }
 0x140   :  { %1039 = vmatprep.mubr.bf16.mxu1 %v226_v26  ;;  %958 = vmatprep.mubr.bf16.mxu0 %v226_v26  ;;  %v1732_v26 = vld [vmem:[#allocation8 + $0x30] sm:$0xff]  }
 0x142   :  { %929 = vmatpush1.bf16.msra.mxu0 %v1660_v27  ;;  %1498 = vmatpush3.bf16.msra.mxu1 %v1664_v28  ;;  %v1733_v27 = vld [vmem:[#allocation8 + $0x78] sm:$0xff]  }
 0x143   :  { %930 = vmatprep.subr.bf16.mxu0 %v1667_v29  ;;  %1499 = vmatprep.subr.bf16.mxu1 %v1668_v30  ;;  %v1734_v28 = vld [vmem:[#allocation8 + $0x38] sm:$0xff]   ;;  %v1895_v29 = vmov 0.0  }
 0x146   :  { %931 = vmatpush1.bf16.msra.mxu0 %v1665_v31  ;;  %1500 = vmatpush3.bf16.msra.mxu1 %v1669_v32 }
 0x147   :  { %932 = vmatprep.subr.bf16.mxu0 %v1672_v33  ;;  %1501 = vmatprep.subr.bf16.mxu1 %v1673_v34 }
 0x14a   :  { %933 = vmatpush1.bf16.msra.mxu0 %v1670_v35  ;;  %1502 = vmatpush3.bf16.msra.mxu1 %v1674_v36  ;;  %v356_v35 = vld [vmem:[#allocation10 + $0x1] ss:$8 sm:$0x7] }
 0x14b   :  { %934 = vmatprep.subr.bf16.mxu0 %v1677_v37  ;;  %1503 = vmatprep.subr.bf16.mxu1 %v1678_v38  ;;  %v369_v36 = vrot.slane %v356_v35, %v100_v39 }
 0x14e   :  { %935 = vmatpush1.bf16.msra.mxu0 %v1675_v40  ;;  %1504 = vmatpush3.bf16.msra.mxu1 %v1679_v41 }
 0x14f   :  { %936 = vmatprep.subr.bf16.mxu0 %v1682_v42  ;;  %1505 = vmatprep.subr.bf16.mxu1 %v1683_v43 }
 0x152   :  { %937 = vmatpush1.bf16.msra.mxu0 %v1680_v45  ;;  %1506 = vmatpush3.bf16.msra.mxu1 %v1684_v46  ;;  %v361_v45 = vrot.slane %v356_v35, %v92_v63  ;;  %v365_v46 = vrot.slane %v356_v35, %v96_v1  ;;  %v1738_v63 = vld [vmem:[#allocation8 + $0x98] sm:$0xff]   ;;  %v1739_v1 = vld [vmem:[#allocation8 + $0xa0] sm:$0xff]  }
 0x153   :  { %938 = vmatprep.subr.bf16.mxu0 %v1687_v47  ;;  %1507 = vmatprep.subr.bf16.mxu1 %v1688_v48 }
 0x156   :  { %939 = vmatpush1.bf16.msra.mxu0 %v1685_v50  ;;  %1508 = vmatpush3.bf16.msra.mxu1 %v1689_v51 }
 0x157   :  { %940 = vmatprep.subr.bf16.mxu0 %v1692_v52  ;;  %1509 = vmatprep.subr.bf16.mxu1 %v1693_v53 }
 0x15a   :  { %941 = vmatpush1.bf16.msra.mxu0 %v1690_v55  ;;  %1510 = vmatpush3.bf16.msra.mxu1 %v1694_v56  ;;  %v1735_v55 = vld [vmem:[#allocation8 + $0x80] sm:$0xff]  }
 0x15b   :  { %942 = vmatprep.subr.bf16.mxu0 %v1697_v57  ;;  %1517 = vmatprep.subr.bf16.mxu1 %v1719_v13  ;;  %v1736_v57 = vld [vmem:[#allocation8 + $0x88] sm:$0xff]  }
 0x15d   :  { %1040 = vmatmul.mubr.bf16.vlgmr.msra.gmra.mrb[8].mxu1 %v225_v58 }
 0x15e   :  { %943 = vmatpush1.bf16.msra.mxu0 %v1695_v59  ;;  %1518 = vmatpush3.bf16.msra.mxu1 %v1720_v14  ;;  %v1741_v59 = vld [vmem:[#allocation8 + $0xb0] sm:$0xff]  }
 0x15f   :  { %944 = vmatprep.subr.bf16.mxu0 %v1700_v60  ;;  %1519 = vmatprep.subr.bf16.mxu1 %v1721_v15  ;;  %v1742_v60 = vld [vmem:[#allocation8 + $0xb8] sm:$0xff]  }
 0x162   :  { %945 = vmatpush1.bf16.msra.mxu0 %v1698_v61  ;;  %1520 = vmatpush3.bf16.msra.mxu1 %v1722_v16 }
 0x163   :  { %946 = vmatprep.subr.bf16.mxu0 %v1703_v0  ;;  %1521 = vmatprep.subr.bf16.mxu1 %v1723_v17 }
 0x166   :  { %947 = vmatpush1.bf16.msra.mxu0 %v1701_v2  ;;  %1522 = vmatpush3.bf16.msra.mxu1 %v1724_v18 }
 0x167   :  { %948 = vmatprep.subr.bf16.mxu0 %v1706_v3  ;;  %1523 = vmatprep.subr.bf16.mxu1 %v1725_v19 }
 0x16a   :  { %949 = vmatpush1.bf16.msra.mxu0 %v1704_v4  ;;  %1524 = vmatpush3.bf16.msra.mxu1 %v1726_v20 }
 0x16b   :  { %950 = vmatprep.subr.bf16.mxu0 %v1709_v5  ;;  %1525 = vmatprep.subr.bf16.mxu1 %v1727_v21 }
 0x16e   :  { %951 = vmatpush1.bf16.msra.mxu0 %v1707_v6  ;;  %1526 = vmatpush3.bf16.msra.mxu1 %v1728_v22 }
 0x16f   :  { %952 = vmatprep.subr.bf16.mxu0 %v1712_v7  ;;  %1527 = vmatprep.subr.bf16.mxu1 %v1729_v23  ;;  %v1101_v7 = vld [vmem:[#allocation10 + $0x2] ss:$0 sm:$0xff] }
 0x172   :  { %953 = vmatpush1.bf16.msra.mxu0 %v1710_v8  ;;  %1528 = vmatpush3.bf16.msra.mxu1 %v1730_v24 }
 0x173   :  { %954 = vmatprep.subr.bf16.mxu0 %v1715_v9  ;;  %1529 = vmatprep.subr.bf16.mxu1 %v1731_v25 }
 0x176   :  { %955 = vmatpush1.bf16.msra.mxu0 %v1713_v10  ;;  %1530 = vmatpush3.bf16.msra.mxu1 %v1732_v26 }
 0x177   :  { %956 = vmatprep.subr.bf16.mxu0 %v1718_v11  ;;  %1531 = vmatprep.subr.bf16.mxu1 %v1733_v27 }
 0x17a   :  { %957 = vmatpush1.bf16.msra.mxu0 %v1716_v12  ;;  %1532 = vmatpush3.bf16.msra.mxu1 %v1734_v28 }
 0x17b   :  { %1548 = vmatprep.subr.bf16.mxu1 %v1895_v29 }
 0x17d   :  { %959 = vmatmul.mubr.bf16.vlgmr.msra.gmra.mrb[4].mxu0 %v225_v58  ;;  %v1740_v58 = vld [vmem:[#allocation8 + $0xa8] sm:$0xff]  }
 0x210   :  { %v1489_v30 = vpop.f32.mrb[4].mxu1 }
 0x211   :  { %v1490_v31 = vpop.f32.mrb[5].mxu1 }
 0x212   :  { %v1491_v32 = vadd.f32 %v1490_v31, %v1489_v30  ;;  %v1492_v33 = vpop.f32.mrb[6].mxu1 }
 0x213   :  { %v1493_v34 = vpop.f32.mrb[7].mxu1 }
 0x214   :  { %v1002_v40 = vadd.f32 %v1491_v32, %v369_v36 }
 0x230   :  { %v1511_v37 = vpop.f32.mrb[8].mxu1 }
 0x231   :  { %v1512_v38 = vpop.f32.mrb[9].mxu1 }
 0x232   :  { %v1513_v41 = vadd.f32 %v1512_v38, %v1511_v37  ;;  %v1514_v42 = vpop.f32.mrb[10].mxu1 }
 0x233   :  { %v1515_v43 = vpop.f32.mrb[11].mxu1 }
 0x234   :  { %v1042_v44 = vadd.f32 %v1513_v41, %v1002_v40 }
 0x236   :  { %v1049_v61 = vmax.f32 %v1042_v44, 0.0 }
 0x238   :  { %v1052_v0 = vpack.c.bf16 %v1049_v61, %v1049_v61 }
 0x250   :  { %v960_v47 = vpop.f32.mrb[4].mxu0 }
 0x251   :  { %v1568_v48 = vadd.f32 %v960_v47, %v361_v45  ;;  %v962_v49 = vpop.f32.mrb[5].mxu0 }
 0x252   :  { %v1569_v50 = vadd.f32 %v962_v49, %v365_v46  ;;  %v964_v51 = vpop.f32.mrb[6].mxu0 }
 0x253   :  { %v1047_v52 = vmax.f32 %v1568_v48, 0.0  ;;  %v965_v39 = vpop.f32.mrb[7].mxu0 }
 0x254   :  { %v1048_v53 = vmax.f32 %v1569_v50, 0.0 }
 0x255   :  { %v1050_v56 = vpack.c.bf16 %v1047_v52, %v1047_v52 }
 0x256   :  { %v1051_v54 = vpack.c.bf16 %v1048_v53, %v1048_v53 }
 0x258   :  { %1278 = vmatprep.mubr.bf16.mxu1 %v1051_v54 }
 0x259   :  { %1279 = vmatmul.mubr.bf16.vlgmr.msra.gmra.mrb[12].mxu1 %v1050_v56 }
 0x25a   :  { %1549 = vmatpush3.bf16.msra.mxu1 %v1735_v55  ;;  %1564 = vmatprep.mubr.msk.bf16.mxu1 %vm1896_vm2, %v1895_v29 }
 0x25b   :  { %1550 = vmatprep.subr.bf16.mxu1 %v1895_v29 }
 0x25e   :  { %1551 = vmatpush3.bf16.msra.mxu1 %v1736_v57 }
 0x25f   :  { %1552 = vmatprep.subr.bf16.mxu1 %v1895_v29 }
 0x262   :  { %1553 = vmatpush3.bf16.msra.mxu1 %v1737_v62 }
 0x263   :  { %1554 = vmatprep.subr.bf16.mxu1 %v1895_v29 }
 0x266   :  { %1555 = vmatpush3.bf16.msra.mxu1 %v1738_v63 }
 0x267   :  { %1556 = vmatprep.subr.bf16.mxu1 %v1895_v29 }
 0x26a   :  { %1557 = vmatpush3.bf16.msra.mxu1 %v1739_v1 }
 0x26b   :  { %1558 = vmatprep.subr.bf16.mxu1 %v1895_v29 }
 0x26e   :  { %1559 = vmatpush3.bf16.msra.mxu1 %v1740_v58 }
 0x26f   :  { %1560 = vmatprep.subr.bf16.mxu1 %v1895_v29 }
 0x272   :  { %1561 = vmatpush3.bf16.msra.mxu1 %v1741_v59 }
 0x273   :  { %1562 = vmatprep.subr.bf16.mxu1 %v1895_v29 }
 0x276   :  { %1563 = vmatpush3.bf16.msra.mxu1 %v1742_v60 }
 0x279   :  { %1565 = vmatmul.mubr.bf16.vlgmr.msra.gmra.mrb[16].mxu1 %v1052_v0 }
 0x32c   :  { %v1533_v2 = vpop.f32.mrb[12].mxu1 }
 0x32d   :  { %v1534_v3 = vpop.f32.mrb[13].mxu1 }
 0x32e   :  { %v1535_v4 = vadd.f32 %v1534_v3, %v1533_v2  ;;  %v1536_v5 = vpop.f32.mrb[14].mxu1 }
 0x32f   :  { %v1537_v6 = vpop.f32.mrb[15].mxu1 }
 0x330   :  { %v1281_v8 = vadd.f32 %v1535_v4, %v1101_v7 }
 0x34c   :  { %v1320_v9 = vpop.f32.mrb[16].mxu1 }
 0x34d   :  { %v1321_v10 = vadd.f32 %v1320_v9, %v1281_v8  ;;  %v1566_v11 = vpop.f32.mrb[17].mxu1 }
 0x34e   :  { %v1323_v12 = vpop.f32.mrb[18].mxu1 }
 0x34f   :  { %1743 = vtanh.f32 %v1321_v10  ;;  %v1567_v13 = vpop.f32.mrb[19].mxu1 }
 0x359   :  { %v1744_v14 = vpop.eup %1743 }
 0x35a   :  { %1327 = vst [vmem:[#allocation11] sm:$0xff] %v1744_v14 }
 0x35b   :  { %1866 = shalt.err (!%p1863_p2)
}
 0x35c   :  { %s1867_s30 = scalar_lea.hbm %s2046_s5, 128 }
 0x35d   :  { %p1868_p3 = scmp.ne.s32.totalorder %s2046_s5, %s1867_s30  ;;  %p1871_p4 = scmp.lt.u32.totalorder %s1867_s30, %s2046_s5 }
 0x35f   :  { %p1873_p5 = pnand %p1871_p4, %p1868_p3 }
 0x361   :  { %1876 = shalt.err (!%p1873_p5)
}
 0x362   :  { %1337 = dma.vmem_to_hbm [thread:$0]  %s1335_s28, 128, %s2046_s5, [#allocation4]  }
 0x363   :  { %1883 = dma.done.wait [#allocation4], 128  }
 0x364   :  { %1884 = vsyncadd [#allocation4], 4294967168 }
 0x365   :  { %1341 = vsyncpa [#allocation3], 1 }
 0x366   :  { %1342 = vsyncpa [#allocation6], 1 }
 0x367   :  { %1343 = vsyncpa [#allocation9], 1 }
 0x368   :  { %1344 = vsyncpa [#allocation4], 1 }

</bundles_post_ra>
